<compile_context>
chip_gen: v6e
topology: v6e:2x2x1
jax: 0.10.0
libtpu: 0.0.40
codegen_flags: <defaults>
</compile_context>

<pallas_src>
import functools
import math

import jax
import jax.numpy as jnp
from jax.experimental import pallas as pl
from jax.experimental.pallas import tpu as pltpu


def _gnn_kernel(a_in_ref, a_out_ref, h0_ref,
                w_e_ref, b_e_ref, b_ah_ref,
                w_gi_in_ref, w_gi_out_ref, w_gh_ref,
                b_gi_ref, b_gh_ref,
                out_ref, *, num_steps):
    Bt, N, H = h0_ref.shape

    A_in = a_in_ref[...]          # (Bt, N, N)
    A_out = a_out_ref[...]        # (Bt, N, N)

    # Weights are already transposed in the wrapper: y = x @ W_t (+ b).
    w_ein = w_e_ref[0]            # (H, H)
    w_eout = w_e_ref[1]           # (H, H)
    b_ein = b_e_ref[0]            # (1, H)
    b_eout = b_e_ref[1]           # (1, H)
    b_iah = b_ah_ref[0]           # (1, H)
    b_oah = b_ah_ref[1]           # (1, H)

    # Fold batch into the matmul M dimension.
    h = h0_ref[...].reshape(Bt * N, H)

    for _ in range(num_steps):
        # edge linears (batch folded -> one MXU call each, M = Bt*N rows)
        ein = jnp.dot(h, w_ein, preferred_element_type=jnp.float32) + b_ein
        eout = jnp.dot(h, w_eout, preferred_element_type=jnp.float32) + b_eout

        # per-sample adjacency matmuls (batched einsum)
        in_in = jnp.einsum('bnm,bmh->bnh', A_in, ein.reshape(Bt, N, H),
                           preferred_element_type=jnp.float32
                           ).reshape(Bt * N, H) + b_iah
        in_out = jnp.einsum('bnm,bmh->bnh', A_out, eout.reshape(Bt, N, H),
                            preferred_element_type=jnp.float32
                            ).reshape(Bt * N, H) + b_oah

        # per-gate pre-activations: lane-aligned (Bt*N, H) tensors, no concat,
        # no lane-axis slicing of a (·, 3H) result.
        def gate_i(g):
            return (jnp.dot(in_in, w_gi_in_ref[g], preferred_element_type=jnp.float32)
                    + jnp.dot(in_out, w_gi_out_ref[g], preferred_element_type=jnp.float32)
                    + b_gi_ref[g])

        def gate_h(g):
            return jnp.dot(h, w_gh_ref[g], preferred_element_type=jnp.float32) + b_gh_ref[g]

        resetgate = jax.nn.sigmoid(gate_i(0) + gate_h(0))
        inputgate = jax.nn.sigmoid(gate_i(1) + gate_h(1))
        newgate = jnp.tanh(gate_i(2) + resetgate * gate_h(2))
        h = h - inputgate * (h - newgate)

    out_ref[...] = h.reshape(Bt, N, H).astype(out_ref.dtype)


def _prep_params(p, H):
    """One-time wrapper-side layout work: transpose & split weights per gate."""
    w_ih = p["w_ih"]   # (3H, 2H)  rows: [r | i | n], cols: [input_in | input_out]
    w_hh = p["w_hh"]   # (3H, H)

    wih_in = jnp.stack([w_ih[g * H:(g + 1) * H, :H].T for g in range(3)])    # (3, H, H)
    wih_out = jnp.stack([w_ih[g * H:(g + 1) * H, H:].T for g in range(3)])   # (3, H, H)
    whh = jnp.stack([w_hh[g * H:(g + 1) * H, :].T for g in range(3)])        # (3, H, H)

    w_e = jnp.stack([p["w_edge_in"].T, p["w_edge_out"].T])                   # (2, H, H)
    b_e = jnp.stack([p["b_edge_in"].reshape(1, H),
                     p["b_edge_out"].reshape(1, H)])                         # (2, 1, H)
    b_ah = jnp.stack([p["b_iah"].reshape(1, H),
                      p["b_oah"].reshape(1, H)])                             # (2, 1, H)
    b_gi = p["b_ih"].reshape(3, 1, H)
    b_gh = p["b_hh"].reshape(3, 1, H)
    return wih_in, wih_out, whh, w_e, b_e, b_ah, b_gi, b_gh


def gnn_pallas(A, hidden, p, *, step=1, batch_tile=None):
    """GNN.forward: `step` propagation steps for the whole batch in one pallas_call."""
    B, N, H = hidden.shape
    assert A.shape == (B, N, 2 * N)
    Bt = B if batch_tile is None else batch_tile
    assert B % Bt == 0

    # Split adjacency in the wrapper so the kernel never lane-slices A.
    A_in = A[:, :, :N]
    A_out = A[:, :, N:]

    wih_in, wih_out, whh, w_e, b_e, b_ah, b_gi, b_gh = _prep_params(p, H)

    batch_map = lambda b: (b, 0, 0)
    full3 = lambda b: (0, 0, 0)

    in_specs = [
        pl.BlockSpec((Bt, N, N), batch_map),     # A_in
        pl.BlockSpec((Bt, N, N), batch_map),     # A_out
        pl.BlockSpec((Bt, N, H), batch_map),     # hidden
        pl.BlockSpec((2, H, H), full3),          # w_edge_in^T / w_edge_out^T
        pl.BlockSpec((2, 1, H), full3),          # b_edge_in / b_edge_out
        pl.BlockSpec((2, 1, H), full3),          # b_iah / b_oah
        pl.BlockSpec((3, H, H), full3),          # w_ih[:, :H]^T per gate
        pl.BlockSpec((3, H, H), full3),          # w_ih[:, H:]^T per gate
        pl.BlockSpec((3, H, H), full3),          # w_hh^T per gate
        pl.BlockSpec((3, 1, H), full3),          # b_ih per gate
        pl.BlockSpec((3, 1, H), full3),          # b_hh per gate
    ]
    out_spec = pl.BlockSpec((Bt, N, H), batch_map)

    kernel = functools.partial(_gnn_kernel, num_steps=step)

    return pl.pallas_call(
        kernel,
        out_shape=jax.ShapeDtypeStruct((B, N, H), hidden.dtype),
        grid_spec=pltpu.PrefetchScalarGridSpec(
            num_scalar_prefetch=0,
            grid=(B // Bt,),
            in_specs=in_specs,
            out_specs=out_spec,
        ),
        compiler_params=pltpu.CompilerParams(
            dimension_semantics=("parallel",)),   # batch tiles are independent
    )(A_in, A_out, hidden,
      w_e, b_e, b_ah, wih_in, wih_out, whh, b_gi, b_gh)


def gcsan_forward(item_ids, A, params, step=1):
    """GCSAN.forward: hidden = embedding(inputs); hidden = gnn(A, hidden)."""
    hidden = jnp.take(params["embedding"], item_ids, axis=0)   # [B, N, H] (glue gather)
    return gnn_pallas(A, hidden, params, step=step)
    # TODO(synk): GCSAN.compute_scores (attention blocks / scoring) is not part of
    # the module's forward() and is not implemented here.


# ---------------- pure-JAX reference (mirrors the PyTorch GNNCell) ----------------
def gnn_cell_ref(A, hidden, p):
    N = A.shape[1]
    H = hidden.shape[-1]
    ein = hidden @ p["w_edge_in"].T + p["b_edge_in"]
    eout = hidden @ p["w_edge_out"].T + p["b_edge_out"]
    input_in = jnp.matmul(A[:, :, :N], ein) + p["b_iah"]
    input_out = jnp.matmul(A[:, :, N:2 * N], eout) + p["b_oah"]
    inputs = jnp.concatenate([input_in, input_out], axis=2)
    gi = inputs @ p["w_ih"].T + p["b_ih"]
    gh = hidden @ p["w_hh"].T + p["b_hh"]
    i_r, i_i, i_n = gi[..., :H], gi[..., H:2 * H], gi[..., 2 * H:]
    h_r, h_i, h_n = gh[..., :H], gh[..., H:2 * H], gh[..., 2 * H:]
    resetgate = jax.nn.sigmoid(i_r + h_r)
    inputgate = jax.nn.sigmoid(i_i + h_i)
    newgate = jnp.tanh(i_n + resetgate * h_n)
    return hidden - inputgate * (hidden - newgate)


def gcsan_forward_ref(item_ids, A, params, step=1):
    hidden = jnp.take(params["embedding"], item_ids, axis=0)
    for _ in range(step):
        hidden = gnn_cell_ref(A, hidden, params)
    return hidden


# ---------------- deterministic parameter init (uniform(-stdv, stdv)) ----------------
def init_params(key, n_node, hidden_size):
    stdv = 1.0 / math.sqrt(hidden_size)
    H = hidden_size
    shapes = {
        "embedding": (n_node + 1, H),
        "w_ih": (3 * H, 2 * H),
        "w_hh": (3 * H, H),
        "b_ih": (3 * H,),
        "b_hh": (3 * H,),
        "b_iah": (H,),
        "b_oah": (H,),
        "w_edge_in": (H, H),
        "b_edge_in": (H,),
        "w_edge_out": (H, H),
        "b_edge_out": (H,),
    }
    keys = jax.random.split(key, len(shapes))
    return {name: jax.random.uniform(k, shp, jnp.float32, -stdv, stdv)
            for (name, shp), k in zip(shapes.items(), keys)}


if __name__ == "__main__":
    B, N, H = 2, 8, 32     # batch, graph nodes per session, item_embedding_dim
    n_node = 50            # number of items (embedding table has n_node+1 rows)
    step = 1

    root = jax.random.PRNGKey(0)
    k_par, k_items, k_A = jax.random.split(root, 3)

    params = init_params(k_par, n_node, H)
    item_ids = jax.random.randint(k_items, (B, N), 0, n_node + 1, dtype=jnp.int32)
    A = jax.random.uniform(k_A, (B, N, 2 * N), jnp.float32, 0.0, 1.0)

    out = jax.block_until_ready(gcsan_forward(item_ids, A, params, step=step))
    ref = jax.block_until_ready(gcsan_forward_ref(item_ids, A, params, step=step))

    assert out.shape == (B, N, H)
    assert jnp.allclose(out, ref, rtol=2e-5, atol=2e-5), float(jnp.max(jnp.abs(out - ref)))
    print("KERNEL_OK")
</pallas_src>

<mosaic_0001>
module attributes {stable_mosaic.version = 11 : i64} {
  func.func @_gnn_kernel(%arg0: i32, %arg1: memref<2x8x8xf32, #tpu.memory_space<vmem>>, %arg2: memref<2x8x8xf32, #tpu.memory_space<vmem>>, %arg3: memref<2x8x32xf32, #tpu.memory_space<vmem>>, %arg4: memref<2x32x32xf32, #tpu.memory_space<vmem>>, %arg5: memref<2x1x32xf32, #tpu.memory_space<vmem>>, %arg6: memref<2x1x32xf32, #tpu.memory_space<vmem>>, %arg7: memref<3x32x32xf32, #tpu.memory_space<vmem>>, %arg8: memref<3x32x32xf32, #tpu.memory_space<vmem>>, %arg9: memref<3x32x32xf32, #tpu.memory_space<vmem>>, %arg10: memref<3x1x32xf32, #tpu.memory_space<vmem>>, %arg11: memref<3x1x32xf32, #tpu.memory_space<vmem>>, %arg12: memref<2x8x32xf32, #tpu.memory_space<vmem>>) attributes {dimension_semantics = [#tpu.dimension_semantics<parallel>], iteration_bounds = array<i64: 1>, scalar_prefetch = 0 : i64, scratch_operands = 0 : i64, tpu.core_type = #tpu.core_type<tc>, window_params = [{transform_indices = @transform_0, window_bounds = array<i64: 2, 8, 8>}, {transform_indices = @transform_1, window_bounds = array<i64: 2, 8, 8>}, {transform_indices = @transform_2, window_bounds = array<i64: 2, 8, 32>}, {pipeline_mode = #tpu.pipeline_mode<synchronous>, transform_indices = @transform_3, window_bounds = array<i64: 2, 32, 32>}, {pipeline_mode = #tpu.pipeline_mode<synchronous>, transform_indices = @transform_4, window_bounds = array<i64: 2, 1, 32>}, {pipeline_mode = #tpu.pipeline_mode<synchronous>, transform_indices = @transform_5, window_bounds = array<i64: 2, 1, 32>}, {pipeline_mode = #tpu.pipeline_mode<synchronous>, transform_indices = @transform_6, window_bounds = array<i64: 3, 32, 32>}, {pipeline_mode = #tpu.pipeline_mode<synchronous>, transform_indices = @transform_7, window_bounds = array<i64: 3, 32, 32>}, {pipeline_mode = #tpu.pipeline_mode<synchronous>, transform_indices = @transform_8, window_bounds = array<i64: 3, 32, 32>}, {pipeline_mode = #tpu.pipeline_mode<synchronous>, transform_indices = @transform_9, window_bounds = array<i64: 3, 1, 32>}, {pipeline_mode = #tpu.pipeline_mode<synchronous>, transform_indices = @transform_10, window_bounds = array<i64: 3, 1, 32>}, {transform_indices = @transform_11, window_bounds = array<i64: 2, 8, 32>}]} {
    %c0 = arith.constant 0 : index
    %c0_0 = arith.constant 0 : index
    %c0_1 = arith.constant 0 : index
    %0 = vector.load %arg1[%c0, %c0_0, %c0_1] : memref<2x8x8xf32, #tpu.memory_space<vmem>>, vector<2x8x8xf32>
    %c0_2 = arith.constant 0 : index
    %c0_3 = arith.constant 0 : index
    %c0_4 = arith.constant 0 : index
    %1 = vector.load %arg2[%c0_2, %c0_3, %c0_4] : memref<2x8x8xf32, #tpu.memory_space<vmem>>, vector<2x8x8xf32>
    %c0_5 = arith.constant 0 : index
    %c0_6 = arith.constant 0 : index
    %c0_7 = arith.constant 0 : index
    %2 = vector.load %arg4[%c0_5, %c0_6, %c0_7] : memref<2x32x32xf32, #tpu.memory_space<vmem>>, vector<1x32x32xf32>
    %3 = vector.shape_cast %2 : vector<1x32x32xf32> to vector<32x32xf32>
    %c1 = arith.constant 1 : index
    %c0_8 = arith.constant 0 : index
    %c0_9 = arith.constant 0 : index
    %4 = vector.load %arg4[%c1, %c0_8, %c0_9] : memref<2x32x32xf32, #tpu.memory_space<vmem>>, vector<1x32x32xf32>
    %5 = vector.shape_cast %4 : vector<1x32x32xf32> to vector<32x32xf32>
    %c0_10 = arith.constant 0 : index
    %c0_11 = arith.constant 0 : index
    %c0_12 = arith.constant 0 : index
    %6 = vector.load %arg5[%c0_10, %c0_11, %c0_12] : memref<2x1x32xf32, #tpu.memory_space<vmem>>, vector<1x1x32xf32>
    %7 = vector.shape_cast %6 : vector<1x1x32xf32> to vector<1x32xf32>
    %c1_13 = arith.constant 1 : index
    %c0_14 = arith.constant 0 : index
    %c0_15 = arith.constant 0 : index
    %8 = vector.load %arg5[%c1_13, %c0_14, %c0_15] : memref<2x1x32xf32, #tpu.memory_space<vmem>>, vector<1x1x32xf32>
    %9 = vector.shape_cast %8 : vector<1x1x32xf32> to vector<1x32xf32>
    %c0_16 = arith.constant 0 : index
    %c0_17 = arith.constant 0 : index
    %c0_18 = arith.constant 0 : index
    %10 = vector.load %arg6[%c0_16, %c0_17, %c0_18] : memref<2x1x32xf32, #tpu.memory_space<vmem>>, vector<1x1x32xf32>
    %11 = vector.shape_cast %10 : vector<1x1x32xf32> to vector<1x32xf32>
    %c1_19 = arith.constant 1 : index
    %c0_20 = arith.constant 0 : index
    %c0_21 = arith.constant 0 : index
    %12 = vector.load %arg6[%c1_19, %c0_20, %c0_21] : memref<2x1x32xf32, #tpu.memory_space<vmem>>, vector<1x1x32xf32>
    %13 = vector.shape_cast %12 : vector<1x1x32xf32> to vector<1x32xf32>
    %c0_22 = arith.constant 0 : index
    %c0_23 = arith.constant 0 : index
    %c0_24 = arith.constant 0 : index
    %14 = vector.load %arg3[%c0_22, %c0_23, %c0_24] : memref<2x8x32xf32, #tpu.memory_space<vmem>>, vector<2x8x32xf32>
    %15 = vector.shape_cast %14 : vector<2x8x32xf32> to vector<16x32xf32>
    %cst = arith.constant dense<0.000000e+00> : vector<16x32xf32>
    %16 = tpu.matmul %15, %3, %cst {dimension_numbers = #tpu.dot_dimension_numbers<[1], [0], [0], [1], [0, 0, 1, 1], [], []>} : vector<16x32xf32>, vector<32x32xf32>, vector<16x32xf32> -> vector<16x32xf32>
    %17 = vector.broadcast %7 : vector<1x32xf32> to vector<16x32xf32>
    %18 = arith.addf %16, %17 : vector<16x32xf32>
    %cst_25 = arith.constant dense<0.000000e+00> : vector<16x32xf32>
    %19 = tpu.matmul %15, %5, %cst_25 {dimension_numbers = #tpu.dot_dimension_numbers<[1], [0], [0], [1], [0, 0, 1, 1], [], []>} : vector<16x32xf32>, vector<32x32xf32>, vector<16x32xf32> -> vector<16x32xf32>
    %20 = vector.broadcast %9 : vector<1x32xf32> to vector<16x32xf32>
    %21 = arith.addf %19, %20 : vector<16x32xf32>
    %22 = vector.shape_cast %18 : vector<16x32xf32> to vector<2x8x32xf32>
    "tpu.trace_start"() <{level = 10 : i32, message = "bnm,bmh->bnh"}> : () -> ()
    %cst_26 = arith.constant dense<0.000000e+00> : vector<2x8x32xf32>
    %23 = tpu.matmul %0, %22, %cst_26 {dimension_numbers = #tpu.dot_dimension_numbers<[2], [1], [1], [2], [0, 0, 0, 1, 1, 2], [0], [0]>} : vector<2x8x8xf32>, vector<2x8x32xf32>, vector<2x8x32xf32> -> vector<2x8x32xf32>
    "tpu.trace_stop"() : () -> ()
    %24 = vector.shape_cast %23 : vector<2x8x32xf32> to vector<16x32xf32>
    %25 = vector.broadcast %11 : vector<1x32xf32> to vector<16x32xf32>
    %26 = arith.addf %24, %25 : vector<16x32xf32>
    %27 = vector.shape_cast %21 : vector<16x32xf32> to vector<2x8x32xf32>
    "tpu.trace_start"() <{level = 10 : i32, message = "bnm,bmh->bnh"}> : () -> ()
    %cst_27 = arith.constant dense<0.000000e+00> : vector<2x8x32xf32>
    %28 = tpu.matmul %1, %27, %cst_27 {dimension_numbers = #tpu.dot_dimension_numbers<[2], [1], [1], [2], [0, 0, 0, 1, 1, 2], [0], [0]>} : vector<2x8x8xf32>, vector<2x8x32xf32>, vector<2x8x32xf32> -> vector<2x8x32xf32>
    "tpu.trace_stop"() : () -> ()
    %29 = vector.shape_cast %28 : vector<2x8x32xf32> to vector<16x32xf32>
    %30 = vector.broadcast %13 : vector<1x32xf32> to vector<16x32xf32>
    %31 = arith.addf %29, %30 : vector<16x32xf32>
    %c0_28 = arith.constant 0 : index
    %c0_29 = arith.constant 0 : index
    %c0_30 = arith.constant 0 : index
    %32 = vector.load %arg7[%c0_28, %c0_29, %c0_30] : memref<3x32x32xf32, #tpu.memory_space<vmem>>, vector<1x32x32xf32>
    %33 = vector.shape_cast %32 : vector<1x32x32xf32> to vector<32x32xf32>
    %cst_31 = arith.constant dense<0.000000e+00> : vector<16x32xf32>
    %34 = tpu.matmul %26, %33, %cst_31 {dimension_numbers = #tpu.dot_dimension_numbers<[1], [0], [0], [1], [0, 0, 1, 1], [], []>} : vector<16x32xf32>, vector<32x32xf32>, vector<16x32xf32> -> vector<16x32xf32>
    %c0_32 = arith.constant 0 : index
    %c0_33 = arith.constant 0 : index
    %c0_34 = arith.constant 0 : index
    %35 = vector.load %arg8[%c0_32, %c0_33, %c0_34] : memref<3x32x32xf32, #tpu.memory_space<vmem>>, vector<1x32x32xf32>
    %36 = vector.shape_cast %35 : vector<1x32x32xf32> to vector<32x32xf32>
    %cst_35 = arith.constant dense<0.000000e+00> : vector<16x32xf32>
    %37 = tpu.matmul %31, %36, %cst_35 {dimension_numbers = #tpu.dot_dimension_numbers<[1], [0], [0], [1], [0, 0, 1, 1], [], []>} : vector<16x32xf32>, vector<32x32xf32>, vector<16x32xf32> -> vector<16x32xf32>
    %38 = arith.addf %34, %37 : vector<16x32xf32>
    %c0_36 = arith.constant 0 : index
    %c0_37 = arith.constant 0 : index
    %c0_38 = arith.constant 0 : index
    %39 = vector.load %arg10[%c0_36, %c0_37, %c0_38] : memref<3x1x32xf32, #tpu.memory_space<vmem>>, vector<1x1x32xf32>
    %40 = vector.shape_cast %39 : vector<1x1x32xf32> to vector<1x32xf32>
    %41 = vector.broadcast %40 : vector<1x32xf32> to vector<16x32xf32>
    %42 = arith.addf %38, %41 : vector<16x32xf32>
    %c0_39 = arith.constant 0 : index
    %c0_40 = arith.constant 0 : index
    %c0_41 = arith.constant 0 : index
    %43 = vector.load %arg9[%c0_39, %c0_40, %c0_41] : memref<3x32x32xf32, #tpu.memory_space<vmem>>, vector<1x32x32xf32>
    %44 = vector.shape_cast %43 : vector<1x32x32xf32> to vector<32x32xf32>
    %cst_42 = arith.constant dense<0.000000e+00> : vector<16x32xf32>
    %45 = tpu.matmul %15, %44, %cst_42 {dimension_numbers = #tpu.dot_dimension_numbers<[1], [0], [0], [1], [0, 0, 1, 1], [], []>} : vector<16x32xf32>, vector<32x32xf32>, vector<16x32xf32> -> vector<16x32xf32>
    %c0_43 = arith.constant 0 : index
    %c0_44 = arith.constant 0 : index
    %c0_45 = arith.constant 0 : index
    %46 = vector.load %arg11[%c0_43, %c0_44, %c0_45] : memref<3x1x32xf32, #tpu.memory_space<vmem>>, vector<1x1x32xf32>
    %47 = vector.shape_cast %46 : vector<1x1x32xf32> to vector<1x32xf32>
    %48 = vector.broadcast %47 : vector<1x32xf32> to vector<16x32xf32>
    %49 = arith.addf %45, %48 : vector<16x32xf32>
    %50 = arith.addf %42, %49 : vector<16x32xf32>
    %51 = arith.negf %50 : vector<16x32xf32>
    %52 = math.exp %51 : vector<16x32xf32>
    %cst_46 = arith.constant 1.000000e+00 : f32
    %53 = vector.broadcast %cst_46 : f32 to vector<16x32xf32>
    %54 = arith.addf %53, %52 : vector<16x32xf32>
    %55 = arith.divf %53, %54 : vector<16x32xf32>
    %c1_47 = arith.constant 1 : index
    %c0_48 = arith.constant 0 : index
    %c0_49 = arith.constant 0 : index
    %56 = vector.load %arg7[%c1_47, %c0_48, %c0_49] : memref<3x32x32xf32, #tpu.memory_space<vmem>>, vector<1x32x32xf32>
    %57 = vector.shape_cast %56 : vector<1x32x32xf32> to vector<32x32xf32>
    %cst_50 = arith.constant dense<0.000000e+00> : vector<16x32xf32>
    %58 = tpu.matmul %26, %57, %cst_50 {dimension_numbers = #tpu.dot_dimension_numbers<[1], [0], [0], [1], [0, 0, 1, 1], [], []>} : vector<16x32xf32>, vector<32x32xf32>, vector<16x32xf32> -> vector<16x32xf32>
    %c1_51 = arith.constant 1 : index
    %c0_52 = arith.constant 0 : index
    %c0_53 = arith.constant 0 : index
    %59 = vector.load %arg8[%c1_51, %c0_52, %c0_53] : memref<3x32x32xf32, #tpu.memory_space<vmem>>, vector<1x32x32xf32>
    %60 = vector.shape_cast %59 : vector<1x32x32xf32> to vector<32x32xf32>
    %cst_54 = arith.constant dense<0.000000e+00> : vector<16x32xf32>
    %61 = tpu.matmul %31, %60, %cst_54 {dimension_numbers = #tpu.dot_dimension_numbers<[1], [0], [0], [1], [0, 0, 1, 1], [], []>} : vector<16x32xf32>, vector<32x32xf32>, vector<16x32xf32> -> vector<16x32xf32>
    %62 = arith.addf %58, %61 : vector<16x32xf32>
    %c1_55 = arith.constant 1 : index
    %c0_56 = arith.constant 0 : index
    %c0_57 = arith.constant 0 : index
    %63 = vector.load %arg10[%c1_55, %c0_56, %c0_57] : memref<3x1x32xf32, #tpu.memory_space<vmem>>, vector<1x1x32xf32>
    %64 = vector.shape_cast %63 : vector<1x1x32xf32> to vector<1x32xf32>
    %65 = vector.broadcast %64 : vector<1x32xf32> to vector<16x32xf32>
    %66 = arith.addf %62, %65 : vector<16x32xf32>
    %c1_58 = arith.constant 1 : index
    %c0_59 = arith.constant 0 : index
    %c0_60 = arith.constant 0 : index
    %67 = vector.load %arg9[%c1_58, %c0_59, %c0_60] : memref<3x32x32xf32, #tpu.memory_space<vmem>>, vector<1x32x32xf32>
    %68 = vector.shape_cast %67 : vector<1x32x32xf32> to vector<32x32xf32>
    %cst_61 = arith.constant dense<0.000000e+00> : vector<16x32xf32>
    %69 = tpu.matmul %15, %68, %cst_61 {dimension_numbers = #tpu.dot_dimension_numbers<[1], [0], [0], [1], [0, 0, 1, 1], [], []>} : vector<16x32xf32>, vector<32x32xf32>, vector<16x32xf32> -> vector<16x32xf32>
    %c1_62 = arith.constant 1 : index
    %c0_63 = arith.constant 0 : index
    %c0_64 = arith.constant 0 : index
    %70 = vector.load %arg11[%c1_62, %c0_63, %c0_64] : memref<3x1x32xf32, #tpu.memory_space<vmem>>, vector<1x1x32xf32>
    %71 = vector.shape_cast %70 : vector<1x1x32xf32> to vector<1x32xf32>
    %72 = vector.broadcast %71 : vector<1x32xf32> to vector<16x32xf32>
    %73 = arith.addf %69, %72 : vector<16x32xf32>
    %74 = arith.addf %66, %73 : vector<16x32xf32>
    %75 = arith.negf %74 : vector<16x32xf32>
    %76 = math.exp %75 : vector<16x32xf32>
    %cst_65 = arith.constant 1.000000e+00 : f32
    %77 = vector.broadcast %cst_65 : f32 to vector<16x32xf32>
    %78 = arith.addf %77, %76 : vector<16x32xf32>
    %79 = arith.divf %77, %78 : vector<16x32xf32>
    %c2 = arith.constant 2 : index
    %c0_66 = arith.constant 0 : index
    %c0_67 = arith.constant 0 : index
    %80 = vector.load %arg7[%c2, %c0_66, %c0_67] : memref<3x32x32xf32, #tpu.memory_space<vmem>>, vector<1x32x32xf32>
    %81 = vector.shape_cast %80 : vector<1x32x32xf32> to vector<32x32xf32>
    %cst_68 = arith.constant dense<0.000000e+00> : vector<16x32xf32>
    %82 = tpu.matmul %26, %81, %cst_68 {dimension_numbers = #tpu.dot_dimension_numbers<[1], [0], [0], [1], [0, 0, 1, 1], [], []>} : vector<16x32xf32>, vector<32x32xf32>, vector<16x32xf32> -> vector<16x32xf32>
    %c2_69 = arith.constant 2 : index
    %c0_70 = arith.constant 0 : index
    %c0_71 = arith.constant 0 : index
    %83 = vector.load %arg8[%c2_69, %c0_70, %c0_71] : memref<3x32x32xf32, #tpu.memory_space<vmem>>, vector<1x32x32xf32>
    %84 = vector.shape_cast %83 : vector<1x32x32xf32> to vector<32x32xf32>
    %cst_72 = arith.constant dense<0.000000e+00> : vector<16x32xf32>
    %85 = tpu.matmul %31, %84, %cst_72 {dimension_numbers = #tpu.dot_dimension_numbers<[1], [0], [0], [1], [0, 0, 1, 1], [], []>} : vector<16x32xf32>, vector<32x32xf32>, vector<16x32xf32> -> vector<16x32xf32>
    %86 = arith.addf %82, %85 : vector<16x32xf32>
    %c2_73 = arith.constant 2 : index
    %c0_74 = arith.constant 0 : index
    %c0_75 = arith.constant 0 : index
    %87 = vector.load %arg10[%c2_73, %c0_74, %c0_75] : memref<3x1x32xf32, #tpu.memory_space<vmem>>, vector<1x1x32xf32>
    %88 = vector.shape_cast %87 : vector<1x1x32xf32> to vector<1x32xf32>
    %89 = vector.broadcast %88 : vector<1x32xf32> to vector<16x32xf32>
    %90 = arith.addf %86, %89 : vector<16x32xf32>
    %c2_76 = arith.constant 2 : index
    %c0_77 = arith.constant 0 : index
    %c0_78 = arith.constant 0 : index
    %91 = vector.load %arg9[%c2_76, %c0_77, %c0_78] : memref<3x32x32xf32, #tpu.memory_space<vmem>>, vector<1x32x32xf32>
    %92 = vector.shape_cast %91 : vector<1x32x32xf32> to vector<32x32xf32>
    %cst_79 = arith.constant dense<0.000000e+00> : vector<16x32xf32>
    %93 = tpu.matmul %15, %92, %cst_79 {dimension_numbers = #tpu.dot_dimension_numbers<[1], [0], [0], [1], [0, 0, 1, 1], [], []>} : vector<16x32xf32>, vector<32x32xf32>, vector<16x32xf32> -> vector<16x32xf32>
    %c2_80 = arith.constant 2 : index
    %c0_81 = arith.constant 0 : index
    %c0_82 = arith.constant 0 : index
    %94 = vector.load %arg11[%c2_80, %c0_81, %c0_82] : memref<3x1x32xf32, #tpu.memory_space<vmem>>, vector<1x1x32xf32>
    %95 = vector.shape_cast %94 : vector<1x1x32xf32> to vector<1x32xf32>
    %96 = vector.broadcast %95 : vector<1x32xf32> to vector<16x32xf32>
    %97 = arith.addf %93, %96 : vector<16x32xf32>
    %98 = arith.mulf %55, %97 : vector<16x32xf32>
    %99 = arith.addf %90, %98 : vector<16x32xf32>
    %100 = math.tanh %99 : vector<16x32xf32>
    %101 = arith.subf %15, %100 : vector<16x32xf32>
    %102 = arith.mulf %79, %101 : vector<16x32xf32>
    %103 = arith.subf %15, %102 : vector<16x32xf32>
    %104 = vector.shape_cast %103 : vector<16x32xf32> to vector<2x8x32xf32>
    %c0_83 = arith.constant 0 : index
    %c0_84 = arith.constant 0 : index
    %c0_85 = arith.constant 0 : index
    %105 = vector.load %arg12[%c0_83, %c0_84, %c0_85] : memref<2x8x32xf32, #tpu.memory_space<vmem>>, vector<2x8x32xf32>
    tpu.vector_store %arg12[%c0_83, %c0_84, %c0_85], %104 {strides = array<i32>} : memref<2x8x32xf32, #tpu.memory_space<vmem>>, vector<2x8x32xf32>,
    return
  }
  func.func @transform_0(%arg0: i32) -> (i32, i32, i32) {
    %c0_i32 = arith.constant 0 : i32
    %c0_i32_0 = arith.constant 0 : i32
    %c0_i32_1 = arith.constant 0 : i32
    return %arg0, %c0_i32, %c0_i32_0 : i32, i32, i32
  }
  func.func @transform_1(%arg0: i32) -> (i32, i32, i32) {
    %c0_i32 = arith.constant 0 : i32
    %c0_i32_0 = arith.constant 0 : i32
    %c0_i32_1 = arith.constant 0 : i32
    return %arg0, %c0_i32, %c0_i32_0 : i32, i32, i32
  }
  func.func @transform_2(%arg0: i32) -> (i32, i32, i32) {
    %c0_i32 = arith.constant 0 : i32
    %c0_i32_0 = arith.constant 0 : i32
    %c0_i32_1 = arith.constant 0 : i32
    return %arg0, %c0_i32, %c0_i32_0 : i32, i32, i32
  }
  func.func @transform_3(%arg0: i32) -> (i32, i32, i32) {
    %c0_i32 = arith.constant 0 : i32
    %c0_i32_0 = arith.constant 0 : i32
    %c0_i32_1 = arith.constant 0 : i32
    %c0_i32_2 = arith.constant 0 : i32
    return %c0_i32, %c0_i32_0, %c0_i32_1 : i32, i32, i32
  }
  func.func @transform_4(%arg0: i32) -> (i32, i32, i32) {
    %c0_i32 = arith.constant 0 : i32
    %c0_i32_0 = arith.constant 0 : i32
    %c0_i32_1 = arith.constant 0 : i32
    %c0_i32_2 = arith.constant 0 : i32
    return %c0_i32, %c0_i32_0, %c0_i32_1 : i32, i32, i32
  }
  func.func @transform_5(%arg0: i32) -> (i32, i32, i32) {
    %c0_i32 = arith.constant 0 : i32
    %c0_i32_0 = arith.constant 0 : i32
    %c0_i32_1 = arith.constant 0 : i32
    %c0_i32_2 = arith.constant 0 : i32
    return %c0_i32, %c0_i32_0, %c0_i32_1 : i32, i32, i32
  }
  func.func @transform_6(%arg0: i32) -> (i32, i32, i32) {
    %c0_i32 = arith.constant 0 : i32
    %c0_i32_0 = arith.constant 0 : i32
    %c0_i32_1 = arith.constant 0 : i32
    %c0_i32_2 = arith.constant 0 : i32
    return %c0_i32, %c0_i32_0, %c0_i32_1 : i32, i32, i32
  }
  func.func @transform_7(%arg0: i32) -> (i32, i32, i32) {
    %c0_i32 = arith.constant 0 : i32
    %c0_i32_0 = arith.constant 0 : i32
    %c0_i32_1 = arith.constant 0 : i32
    %c0_i32_2 = arith.constant 0 : i32
    return %c0_i32, %c0_i32_0, %c0_i32_1 : i32, i32, i32
  }
  func.func @transform_8(%arg0: i32) -> (i32, i32, i32) {
    %c0_i32 = arith.constant 0 : i32
    %c0_i32_0 = arith.constant 0 : i32
    %c0_i32_1 = arith.constant 0 : i32
    %c0_i32_2 = arith.constant 0 : i32
    return %c0_i32, %c0_i32_0, %c0_i32_1 : i32, i32, i32
  }
  func.func @transform_9(%arg0: i32) -> (i32, i32, i32) {
    %c0_i32 = arith.constant 0 : i32
    %c0_i32_0 = arith.constant 0 : i32
    %c0_i32_1 = arith.constant 0 : i32
    %c0_i32_2 = arith.constant 0 : i32
    return %c0_i32, %c0_i32_0, %c0_i32_1 : i32, i32, i32
  }
  func.func @transform_10(%arg0: i32) -> (i32, i32, i32) {
    %c0_i32 = arith.constant 0 : i32
    %c0_i32_0 = arith.constant 0 : i32
    %c0_i32_1 = arith.constant 0 : i32
    %c0_i32_2 = arith.constant 0 : i32
    return %c0_i32, %c0_i32_0, %c0_i32_1 : i32, i32, i32
  }
  func.func @transform_11(%arg0: i32) -> (i32, i32, i32) {
    %c0_i32 = arith.constant 0 : i32
    %c0_i32_0 = arith.constant 0 : i32
    %c0_i32_1 = arith.constant 0 : i32
    return %arg0, %c0_i32, %c0_i32_0 : i32, i32, i32
  }
}

</mosaic_0001>

<bundles_post_ra>
// kernel: tpu_custom_call.1
= control target key start
LH: loop header
LB: loop body
LE: loop exit
PB: predicated region body
PF: predicated region fallthrough
CT: control target
= control target key end

     0   :  { %16 = vsyncpa [#allocation3], 0  ;;  %s2198_s0 = inlined_call_operand.hbm [shape: f32[2,8,8], index: 0, kind: input, shape index: {}]   ;;  %s2199_s1 = inlined_call_operand.hbm [shape: f32[2,8,8], index: 1, kind: input, shape index: {}]   ;;  %s2200_s2 = inlined_call_operand.hbm [shape: f32[2,8,32], index: 2, kind: input, shape index: {}]   ;;  %s2201_s3 = inlined_call_operand.hbm [shape: f32[2,32,32], index: 3, kind: input, shape index: {}]   ;;  %s2202_s4 = inlined_call_operand.hbm [shape: f32[2,1,32], index: 4, kind: input, shape index: {}]   ;;  %s2203_s5 = inlined_call_operand.vmem [shape: f32[2,1,32], index: 5, kind: input, shape index: {}]   ;;  %s2204_s6 = inlined_call_operand.hbm [shape: f32[3,32,32], index: 6, kind: input, shape index: {}]   ;;  %s2205_s7 = inlined_call_operand.hbm [shape: f32[3,32,32], index: 7, kind: input, shape index: {}]   ;;  %s2206_s8 = inlined_call_operand.hbm [shape: f32[3,32,32], index: 8, kind: input, shape index: {}]   ;;  %s2207_s9 = inlined_call_operand.vmem [shape: f32[3,1,32], index: 9, kind: input, shape index: {}]   ;;  %s2208_s10 = inlined_call_operand.vmem [shape: f32[3,1,32], index: 10, kind: input, shape index: {}]   ;;  %s2209_s11 = inlined_call_operand.hbm [shape: f32[2,8,32], index: 11, kind: output, shape index: {}]  }
   0x1   :  { %17 = vsyncpa [#allocation6], 0 }
   0x2   :  { %18 = vsyncpa [#allocation9], 0 }
   0x3   :  { %19 = vsyncpa [#allocation12], 0 }
   0x4   :  { %20 = vsyncpa [#allocation15], 0 }
   0x5   :  { %21 = vsyncpa [#allocation4], 0  ;;  %s1978_s17 = smov [#allocation5]   ;;  %s1979_s19 = smov [#allocation8]  }
   0x6   :  { %s39_s18 = sshll.u32 %s1978_s17, 4  ;;  %s63_s20 = sshll.u32 %s1979_s19, 4  ;;  %s40_s18 = int_to_ptr.vmem [resolvable:$true] %s39_s18  ;;  %s64_s20 = int_to_ptr.vmem [resolvable:$true] %s63_s20 }
   0x7   :  { %s1794_s21 = scalar_lea.vmem %s40_s18, 256  ;;  %p1799_p1 = scmp.lt.s32.totalorder %s40_s18, %s40_s18 }
   0x8   :  { %p1795_p0 = scmp.ne.s32.totalorder %s40_s18, %s1794_s21  ;;  %p1800_p2 = scmp.lt.s32.totalorder %s1794_s21, %s1794_s21 }
   0xa   :  { %p1801_p3 = por %p1800_p2, %p1799_p1 }
   0xc   :  { %p1802_p4 = pnand %p1801_p3, %p1795_p0 }
   0xe   :  { %1805 = shalt.err (!%p1802_p4)
}
   0xf   :  { %s1980_s22 = smov 128   ;;  %s1981_s23 = smov 8  }
  0x10   :  { %45 = dma.hbm_to_vmem [thread:$0]  %s2199_s1, 256, %s40_s18, [#allocation6], %s1980_s22, %s1980_s22, %s1981_s23  }
  0x11   :  { %s1814_s26 = scalar_lea.vmem %s64_s20, 1024  ;;  %p1819_p6 = scmp.lt.s32.totalorder %s64_s20, %s64_s20 }
  0x12   :  { %p1815_p5 = scmp.ne.s32.totalorder %s64_s20, %s1814_s26  ;;  %p1820_p7 = scmp.lt.s32.totalorder %s1814_s26, %s1814_s26 }
  0x14   :  { %p1821_p8 = por %p1820_p7, %p1819_p6 }
  0x16   :  { %p1822_p9 = pnand %p1821_p8, %p1815_p5 }
  0x18   :  { %1825 = shalt.err (!%p1822_p9)
}
  0x19   :  { %69 = dma.hbm_to_vmem [thread:$0]  %s2201_s3, 1024, %s64_s20, [#allocation9], %s1980_s22, %s1980_s22, %s1981_s23  }
  0x1a   :  { %s1982_s29 = smov [#allocation11]   ;;  %s1983_s12 = smov [#allocation2]  }
  0x1b   :  { %s89_s30 = sshll.u32 %s1982_s29, 4  ;;  %s27_s13 = sshll.u32 %s1983_s12, 4  ;;  %s90_s30 = int_to_ptr.vmem [resolvable:$true] %s89_s30  ;;  %s28_s13 = int_to_ptr.vmem [resolvable:$true] %s27_s13 }
  0x1c   :  { %s1834_s1 = scalar_lea.vmem %s90_s30, 1536  ;;  %p1839_p11 = scmp.lt.s32.totalorder %s90_s30, %s90_s30 }
  0x1d   :  { %p1835_p10 = scmp.ne.s32.totalorder %s90_s30, %s1834_s1  ;;  %p1840_p12 = scmp.lt.s32.totalorder %s1834_s1, %s1834_s1 }
  0x1f   :  { %p1841_p13 = por %p1840_p12, %p1839_p11 }
  0x21   :  { %p1842_p0 = pnand %p1841_p13, %p1835_p10 }
  0x23   :  { %1845 = shalt.err (!%p1842_p0)
}
  0x24   :  { %95 = dma.hbm_to_vmem [thread:$0]  %s2204_s6, 1536, %s90_s30, [#allocation12], %s1980_s22, %s1980_s22, %s1981_s23  }
  0x25   :  { %s1854_s3 = scalar_lea.vmem %s28_s13, 256  ;;  %p1859_p2 = scmp.lt.s32.totalorder %s28_s13, %s28_s13 }
  0x26   :  { %p1855_p1 = scmp.ne.s32.totalorder %s28_s13, %s1854_s3  ;;  %p1860_p3 = scmp.lt.s32.totalorder %s1854_s3, %s1854_s3 }
  0x28   :  { %p1861_p4 = por %p1860_p3, %p1859_p2 }
  0x2a   :  { %p1862_p5 = pnand %p1861_p4, %p1855_p1 }
  0x2c   :  { %1865 = shalt.err (!%p1862_p5)
}
  0x2d   :  { %33 = dma.hbm_to_vmem [thread:$0]  %s2198_s0, 256, %s28_s13, [#allocation3], %s1980_s22, %s1980_s22, %s1981_s23  }
  0x2e   :  { %s1984_s18 = smov [#allocation7]   ;;  %s1985_s20 = smov [#allocation10]  }
  0x2f   :  { %s51_s19 = sshll.u32 %s1984_s18, 4  ;;  %s75_s21 = sshll.u32 %s1985_s20, 4  ;;  %s52_s19 = int_to_ptr.vmem [resolvable:$true] %s51_s19  ;;  %s76_s21 = int_to_ptr.vmem [resolvable:$true] %s75_s21 }
  0x30   :  { %s1874_s6 = scalar_lea.vmem %s52_s19, 256  ;;  %p1879_p7 = scmp.lt.s32.totalorder %s52_s19, %s52_s19 }
  0x31   :  { %p1875_p6 = scmp.ne.s32.totalorder %s52_s19, %s1874_s6  ;;  %p1880_p8 = scmp.lt.s32.totalorder %s1874_s6, %s1874_s6 }
  0x33   :  { %p1881_p9 = por %p1880_p8, %p1879_p7 }
  0x35   :  { %p1882_p10 = pnand %p1881_p9, %p1875_p6 }
  0x37   :  { %1885 = shalt.err (!%p1882_p10)
}
  0x38   :  { %57 = dma.hbm_to_vmem [thread:$0]  %s2200_s2, 256, %s52_s19, [#allocation6], %s1980_s22, %s1980_s22, %s1981_s23  }
  0x39   :  { %s1894_s0 = scalar_lea.vmem %s76_s21, 32  ;;  %p1899_p12 = scmp.lt.s32.totalorder %s76_s21, %s76_s21 }
  0x3a   :  { %p1895_p11 = scmp.ne.s32.totalorder %s76_s21, %s1894_s0  ;;  %p1900_p13 = scmp.lt.s32.totalorder %s1894_s0, %s1894_s0 }
  0x3c   :  { %p1901_p0 = por %p1900_p13, %p1899_p12 }
  0x3e   :  { %p1902_p1 = pnand %p1901_p0, %p1895_p11 }
  0x40   :  { %1905 = shalt.err (!%p1902_p1)
}
  0x41   :  { %s1986_s26 = smov 16   ;;  %s1987_s27 = smov 1  }
  0x42   :  { %81 = dma.hbm_to_vmem [thread:$0]  %s2202_s4, 32, %s76_s21, [#allocation9], %s1986_s26, %s1986_s26, %s1987_s27  }
  0x43   :  { %s1988_s30 = smov [#allocation13]   ;;  %s1989_s13 = smov [#allocation14]  }
  0x44   :  { %s101_s12 = sshll.u32 %s1988_s30, 4  ;;  %s113_s1 = sshll.u32 %s1989_s13, 4  ;;  %s102_s12 = int_to_ptr.vmem [resolvable:$true] %s101_s12  ;;  %s114_s1 = int_to_ptr.vmem [resolvable:$true] %s113_s1 }
  0x45   :  { %s1914_s2 = scalar_lea.vmem %s102_s12, 1536  ;;  %p1919_p3 = scmp.lt.s32.totalorder %s102_s12, %s102_s12 }
  0x46   :  { %p1915_p2 = scmp.ne.s32.totalorder %s102_s12, %s1914_s2  ;;  %p1920_p4 = scmp.lt.s32.totalorder %s1914_s2, %s1914_s2 }
  0x48   :  { %p1921_p5 = por %p1920_p4, %p1919_p3 }
  0x4a   :  { %p1922_p6 = pnand %p1921_p5, %p1915_p2 }
  0x4c   :  { %1925 = shalt.err (!%p1922_p6)
}
  0x4d   :  { %107 = dma.hbm_to_vmem [thread:$0]  %s2205_s7, 1536, %s102_s12, [#allocation12], %s1980_s22, %s1980_s22, %s1981_s23  }
  0x4e   :  { %s1934_s4 = scalar_lea.vmem %s114_s1, 1536  ;;  %p1939_p8 = scmp.lt.s32.totalorder %s114_s1, %s114_s1 }
  0x4f   :  { %p1935_p7 = scmp.ne.s32.totalorder %s114_s1, %s1934_s4  ;;  %p1940_p9 = scmp.lt.s32.totalorder %s1934_s4, %s1934_s4 }
  0x51   :  { %p1941_p10 = por %p1940_p9, %p1939_p8 }
  0x53   :  { %p1942_p11 = pnand %p1941_p10, %p1935_p7 }
  0x55   :  { %1945 = shalt.err (!%p1942_p11)
}
  0x56   :  { %119 = dma.hbm_to_vmem [thread:$0]  %s2206_s8, 1536, %s114_s1, [#allocation15], %s1980_s22, %s1980_s22, %s1981_s23  }
  0x57   :  { %1966 = dma.done.wait [#allocation3], 256  }
  0x58   :  { %1967 = vsyncadd [#allocation3], 4294967040 }
  0x59   :  { %1968 = dma.done.wait [#allocation6], 512  }
  0x5a   :  { %1969 = vsyncadd [#allocation6], 4294966784 }
  0x5b   :  { %1970 = dma.done.wait [#allocation9], 1056  }
  0x5c   :  { %1971 = vsyncadd [#allocation9], 4294966240 }
  0x5d   :  { %1972 = dma.done.wait [#allocation12], 3072  }
  0x5e   :  { %1973 = vsyncadd [#allocation12], 4294964224 }
  0x5f   :  { %1974 = dma.done.wait [#allocation15], 1536  }
  0x60   :  { %1975 = vsyncadd [#allocation15], 4294965760  ;;  %v155_v0 = vld [vmem:[#allocation8 + $0x18] sm:$0xff]  ;;  %v154_v1 = vld [vmem:[#allocation8 + $0x10] sm:$0xff]  ;;  %vm175_vm0 = vcmask 261120   ;;  %v1990_v10 = vmov 0.0  }
  0x61   :  { %1610 = vmatprep.subr.mxu0 %v155_v0  ;;  %v160_v2 = vld [vmem:[#allocation8 + $0x38] sm:$0xff]  ;;  %v2098_v3 = vld [vmem:[#allocation7] sm:$0xff]  ;;  %v153_v4 = vld [vmem:[#allocation8 + $0x8] sm:$0xff]  ;;  %vm1991_vm1 = vmmov 0   ;;  %vm338_vm2 = vcmask 64512  }
  0x62   :  { %1611 = vmatpush3.msra.mxu0 %v155_v0  ;;  %1621 = vmatprep.subr.mxu1 %v160_v2  ;;  %v159_v5 = vld [vmem:[#allocation8 + $0x30] sm:$0xff]  ;;  %v152_v6 = vld [vmem:[#allocation8] sm:$0xff]  ;;  %v158_v7 = vld [vmem:[#allocation8 + $0x28] sm:$0xff] }
  0x63   :  { %1612 = vmatprep.subr.mxu0 %v154_v1  ;;  %1622 = vmatpush3.msra.mxu1 %v160_v2  ;;  %v2102_v8 = vld [vmem:[#allocation7 + $0x8] sm:$0xff]  ;;  %v157_v9 = vld [vmem:[#allocation8 + $0x20] sm:$0xff]  ;;  %v148_v17 = vld [vmem:[#allocation2] sm:$0xff] }
  0x64   :  { %1613 = vmatpush3.msra.mxu0 %v154_v1  ;;  %1618 = vmatprep.mubr.msk.f32.mxu0 %vm175_vm0, %v2098_v3  ;;  %v1492_v12 = vld [vmem:[#allocation10] ss:$0 sm:$0xff]  ;;  %v1495_v15 = vld [vmem:[#allocation10 + $0x1] ss:$0 sm:$0xff]  ;;  %v149_v23 = vld [vmem:[#allocation2 + $0x8] sm:$0xff] }
  0x65   :  { %1614 = vmatprep.subr.mxu0 %v153_v4  ;;  %1623 = vmatprep.subr.mxu1 %v159_v5  ;;  %v150_v21 = vld [vmem:[#allocation5] sm:$0xff]  ;;  %v151_v25 = vld [vmem:[#allocation5 + $0x8] sm:$0xff]  ;;  %v649_v26 = vld [vmem:[#allocation11 + $0x10] sm:$0xff] }
  0x66   :  { %1615 = vmatpush3.msra.mxu0 %v153_v4  ;;  %1624 = vmatpush3.msra.mxu1 %v159_v5  ;;  %v650_v24 = vld [vmem:[#allocation11 + $0x18] sm:$0xff]  ;;  %v648_v28 = vld [vmem:[#allocation11 + $0x8] sm:$0xff]  ;;  %v653_v29 = vld [vmem:[#allocation13 + $0x10] sm:$0xff] }
  0x67   :  { %1616 = vmatprep.subr.mxu0 %v152_v6  ;;  %1625 = vmatprep.subr.mxu1 %v158_v7  ;;  %v654_v27 = vld [vmem:[#allocation13 + $0x18] sm:$0xff]  ;;  %v647_v30 = vld [vmem:[#allocation11] sm:$0xff]  ;;  %v652_v31 = vld [vmem:[#allocation13 + $0x8] sm:$0xff] }
  0x68   :  { %1617 = vmatpush3.msra.mxu0 %v152_v6  ;;  %1626 = vmatpush3.msra.mxu1 %v158_v7  ;;  %v935_v32 = vld [vmem:[#allocation13 + $0x38] sm:$0xff]  ;;  %v651_v33 = vld [vmem:[#allocation13] sm:$0xff]  ;;  %v1500_v35 = vld [vmem:[%s2203_s5] ss:$0 sm:$0xff] }
  0x69   :  { %1619 = vmatmul.mubr.msk.f32.vlgmr.msra.gmra.mxu0 %vm175_vm0, %v2102_v8  ;;  %1627 = vmatprep.subr.mxu1 %v157_v9  ;;  %v829_v34 = vld [vmem:[#allocation14 + $0x18] sm:$0xff]  ;;  %v1503_v38 = vld [vmem:[%s2203_s5 + $0x1] ss:$0 sm:$0xff]  ;;  %v934_v46 = vld [vmem:[#allocation13 + $0x30] sm:$0xff] }
  0x6a   :  { %1628 = vmatpush3.msra.mxu1 %v157_v9  ;;  %1629 = vmatprep.mubr.msk.f32.mxu1 %vm175_vm0, %v2098_v3  ;;  %v933_v48 = vld [vmem:[#allocation13 + $0x28] sm:$0xff]  ;;  %v828_v51 = vld [vmem:[#allocation14 + $0x10] sm:$0xff]  ;;  %v932_v52 = vld [vmem:[#allocation13 + $0x20] sm:$0xff] }
  0x6b   :  { %1630 = vmatmul.mubr.msk.f32.vlgmr.msra.gmra.mxu1 %vm175_vm0, %v2102_v8  ;;  %1632 = vmatprep.subr.mxu1 %v1990_v10  ;;  %v827_v53 = vld [vmem:[#allocation14 + $0x8] sm:$0xff]  ;;  %v1100_v54 = vld [vmem:[#allocation14 + $0x38] sm:$0xff]  ;;  %v826_v55 = vld [vmem:[#allocation14] sm:$0xff] }
  0x6c   :  { %1642 = vmatprep.subr.mxu0 %v1990_v10  ;;  %1634 = vmatprep.mubr.msk.f32.mxu1 %vm1991_vm1, %v1990_v10  ;;  %v1099_v56 = vld [vmem:[#allocation14 + $0x30] sm:$0xff]  ;;  %v930_v57 = vld [vmem:[#allocation11 + $0x38] sm:$0xff]  ;;  %v1098_v58 = vld [vmem:[#allocation14 + $0x28] sm:$0xff] }
  0x6d   :  { %1644 = vmatprep.mubr.msk.f32.mxu0 %vm1991_vm1, %v1990_v10  ;;  %v929_v59 = vld [vmem:[#allocation11 + $0x30] sm:$0xff]  ;;  %v1097_v60 = vld [vmem:[#allocation14 + $0x20] sm:$0xff]  ;;  %v928_v61 = vld [vmem:[#allocation11 + $0x28] sm:$0xff] }
  0x6e   :  { %v1202_v62 = vld [vmem:[#allocation11 + $0x58] sm:$0xff]  ;;  %v927_v63 = vld [vmem:[#allocation11 + $0x20] sm:$0xff]  ;;  %v1201_v0 = vld [vmem:[#allocation11 + $0x50] sm:$0xff] }
  0x6f   :  { %v1207_v1 = vld [vmem:[#allocation13 + $0x58] sm:$0xff]  ;;  %v1200_v2 = vld [vmem:[#allocation11 + $0x48] sm:$0xff]  ;;  %v1206_v4 = vld [vmem:[#allocation13 + $0x50] sm:$0xff] }
  0x70   :  { %v1199_v5 = vld [vmem:[#allocation11 + $0x40] sm:$0xff]  ;;  %v1205_v6 = vld [vmem:[#allocation13 + $0x48] sm:$0xff]  ;;  %v1372_v9 = vld [vmem:[#allocation14 + $0x58] sm:$0xff] }
  0x71   :  { %v1204_v7 = vld [vmem:[#allocation13 + $0x40] sm:$0xff] }
 0x129   :  { %v1620_v11 = vpop.f32.mrf.mxu0 }
 0x12a   :  { %v254_v19 = vadd.f32 %v1620_v11, %v1492_v12  ;;  %v1370_v11 = vld [vmem:[#allocation14 + $0x48] sm:$0xff] }
 0x12b   :  { %v248_v13 = vpop.f32.mrf.mxu0  ;;  %v1631_v14 = vpop.f32.mrf.mxu1 }
 0x12c   :  { %v249_v16 = vadd.f32 %v1492_v12, %v248_v13  ;;  %v335_v22 = vadd.f32 %v1631_v14, %v1495_v15  ;;  %v1369_v12 = vld [vmem:[#allocation14 + $0x40] sm:$0xff] }
 0x12d   :  { %v329_v18 = vpop.f32.mrf.mxu1 }
 0x12e   :  { %1633 = vmatpush3.msra.mxu1 %v249_v16  ;;  %v330_v20 = vadd.f32 %v1495_v15, %v329_v18  ;;  %v1508_v18 = vld [vmem:[%s2207_s9] ss:$0 sm:$0xff] }
 0x12f   :  { %1635 = vmatmul.mubr.msk.f32.vlgmr.msra.gmra.mxu1 %vm338_vm2, %v148_v17  ;;  %1637 = vmatprep.subr.mxu1 %v1990_v10 }
 0x130   :  { %1638 = vmatpush3.msra.mxu1 %v254_v19  ;;  %1639 = vmatprep.mubr.msk.f32.mxu1 %vm1991_vm1, %v1990_v10  ;;  %v1509_v19 = vld [vmem:[%s2208_s10] ss:$0 sm:$0xff] }
 0x131   :  { %1647 = vmatprep.subr.mxu1 %v1990_v10  ;;  %1643 = vmatpush3.msra.mxu0 %v330_v20 }
 0x132   :  { %1645 = vmatmul.mubr.msk.f32.vlgmr.msra.gmra.mxu0 %vm338_vm2, %v150_v21  ;;  %1652 = vmatprep.subr.mxu0 %v654_v27 }
 0x133   :  { %1640 = vmatmul.mubr.msk.f32.vlgmr.msra.gmra.mxu1 %vm338_vm2, %v149_v23  ;;  %1653 = vmatpush3.msra.mxu0 %v654_v27 }
 0x134   :  { %1648 = vmatpush3.msra.mxu1 %v335_v22  ;;  %1649 = vmatprep.mubr.msk.f32.mxu1 %vm1991_vm1, %v1990_v10  ;;  %v1371_v10 = vld [vmem:[#allocation14 + $0x50] sm:$0xff] }
 0x135   :  { %1663 = vmatprep.subr.mxu1 %v650_v24  ;;  %1654 = vmatprep.subr.mxu0 %v653_v29 }
 0x136   :  { %1655 = vmatpush3.msra.mxu0 %v653_v29 }
 0x137   :  { %1650 = vmatmul.mubr.msk.f32.vlgmr.msra.gmra.mxu1 %vm338_vm2, %v151_v25  ;;  %1656 = vmatprep.subr.mxu0 %v652_v31 }
 0x138   :  { %1664 = vmatpush3.msra.mxu1 %v650_v24  ;;  %1657 = vmatpush3.msra.mxu0 %v652_v31 }
 0x139   :  { %1665 = vmatprep.subr.mxu1 %v649_v26  ;;  %1658 = vmatprep.subr.mxu0 %v651_v33 }
 0x13a   :  { %1666 = vmatpush3.msra.mxu1 %v649_v26  ;;  %1659 = vmatpush3.msra.mxu0 %v651_v33 }
 0x13b   :  { %1667 = vmatprep.subr.mxu1 %v648_v28  ;;  %1674 = vmatprep.subr.mxu0 %v829_v34 }
 0x13c   :  { %1668 = vmatpush3.msra.mxu1 %v648_v28 }
 0x13d   :  { %1669 = vmatprep.subr.mxu1 %v647_v30 }
 0x13e   :  { %1670 = vmatpush3.msra.mxu1 %v647_v30 }
 0x13f   :  { %1685 = vmatprep.subr.mxu1 %v935_v32 }
 0x1ef   :  { %v408_v36 = vpop.f32.mrf.mxu1 }
 0x1f0   :  { %v2121_v37 = vadd.f32 %v1500_v35, %v408_v36  ;;  %v1519_v36 = vld [vmem:[%s2207_s9 + $0x1] ss:$0 sm:$0xff] }
 0x1f1   :  { %v1636_v39 = vpop.f32.mrf.mxu1 }
 0x1f2   :  { %1671 = vmatprep.mubr.msk.f32.mxu1 %vm175_vm0, %v2121_v37  ;;  %v562_v40 = vpop.f32.mrf.mxu0 }
 0x1f3   :  { %v481_v41 = vpop.f32.mrf.mxu1  ;;  %v2128_v42 = vadd.f32 %v1503_v38, %v562_v40 }
 0x1f4   :  { %v2130_v43 = vadd.f32 %v1500_v35, %v481_v41  ;;  %v1646_v44 = vpop.f32.mrf.mxu0 }
 0x1f5   :  { %v1641_v45 = vpop.f32.mrf.mxu1  ;;  %1660 = vmatprep.mubr.msk.f32.mxu0 %vm175_vm0, %v2128_v42 }
 0x1f6   :  { %1672 = vmatmul.mubr.msk.f32.vlgmr.msra.gmra.mxu1 %vm175_vm0, %v2130_v43 }
 0x1f7   :  { %1686 = vmatpush3.msra.mxu1 %v935_v32  ;;  %v635_v47 = vpop.f32.mrf.mxu1  ;;  %1693 = vmatprep.mubr.msk.f32.mxu1 %vm175_vm0, %v2128_v42 }
 0x1f8   :  { %v2138_v49 = vadd.f32 %v1503_v38, %v635_v47  ;;  %1687 = vmatprep.subr.mxu1 %v934_v46 }
 0x1f9   :  { %1688 = vmatpush3.msra.mxu1 %v934_v46  ;;  %v1651_v50 = vpop.f32.mrf.mxu1 }
 0x1fa   :  { %1689 = vmatprep.subr.mxu1 %v933_v48  ;;  %1661 = vmatmul.mubr.msk.f32.vlgmr.msra.gmra.mxu0 %vm175_vm0, %v2138_v49 }
 0x1fb   :  { %1675 = vmatpush3.msra.mxu0 %v829_v34  ;;  %1690 = vmatpush3.msra.mxu1 %v933_v48  ;;  %v1521_v34 = vld [vmem:[%s2208_s10 + $0x1] ss:$0 sm:$0xff] }
 0x1fc   :  { %1676 = vmatprep.subr.mxu0 %v828_v51  ;;  %1691 = vmatprep.subr.mxu1 %v932_v52 }
 0x1fd   :  { %1677 = vmatpush3.msra.mxu0 %v828_v51  ;;  %1692 = vmatpush3.msra.mxu1 %v932_v52 }
 0x1fe   :  { %1678 = vmatprep.subr.mxu0 %v827_v53  ;;  %1694 = vmatmul.mubr.msk.f32.vlgmr.msra.gmra.mxu1 %vm175_vm0, %v2138_v49 }
 0x1ff   :  { %1707 = vmatprep.subr.mxu1 %v1100_v54  ;;  %1679 = vmatpush3.msra.mxu0 %v827_v53 }
 0x200   :  { %1708 = vmatpush3.msra.mxu1 %v1100_v54  ;;  %1680 = vmatprep.subr.mxu0 %v826_v55 }
 0x201   :  { %1709 = vmatprep.subr.mxu1 %v1099_v56  ;;  %1681 = vmatpush3.msra.mxu0 %v826_v55 }
 0x202   :  { %1682 = vmatprep.mubr.msk.f32.mxu0 %vm175_vm0, %v2098_v3  ;;  %1710 = vmatpush3.msra.mxu1 %v1099_v56 }
 0x203   :  { %1683 = vmatmul.mubr.msk.f32.vlgmr.msra.gmra.mxu0 %vm175_vm0, %v2102_v8  ;;  %1696 = vmatprep.subr.mxu0 %v930_v57 }
 0x204   :  { %1711 = vmatprep.subr.mxu1 %v1098_v58  ;;  %1697 = vmatpush3.msra.mxu0 %v930_v57  ;;  %v1533_v57 = vld [vmem:[%s2208_s10 + $0x2] ss:$0 sm:$0xff] }
 0x205   :  { %1704 = vmatprep.mubr.msk.f32.mxu0 %vm175_vm0, %v2121_v37  ;;  %1712 = vmatpush3.msra.mxu1 %v1098_v58 }
 0x206   :  { %1698 = vmatprep.subr.mxu0 %v929_v59  ;;  %1713 = vmatprep.subr.mxu1 %v1097_v60 }
 0x207   :  { %1699 = vmatpush3.msra.mxu0 %v929_v59  ;;  %1714 = vmatpush3.msra.mxu1 %v1097_v60 }
 0x208   :  { %1715 = vmatprep.mubr.msk.f32.mxu1 %vm175_vm0, %v2098_v3  ;;  %1700 = vmatprep.subr.mxu0 %v928_v61 }
 0x209   :  { %1716 = vmatmul.mubr.msk.f32.vlgmr.msra.gmra.mxu1 %vm175_vm0, %v2102_v8  ;;  %1729 = vmatprep.subr.mxu1 %v1202_v62 }
 0x20a   :  { %1701 = vmatpush3.msra.mxu0 %v928_v61  ;;  %1730 = vmatpush3.msra.mxu1 %v1202_v62  ;;  %v1531_v61 = vld [vmem:[%s2207_s9 + $0x2] ss:$0 sm:$0xff]  ;;  %s1992_s9 = smov [#allocation16]  }
 0x20b   :  { %1737 = vmatprep.mubr.msk.f32.mxu1 %vm175_vm0, %v2121_v37  ;;  %1702 = vmatprep.subr.mxu0 %v927_v63  ;;  %s1475_s10 = sshll.u32 %s1992_s9, 4  ;;  %s1476_s10 = int_to_ptr.vmem [resolvable:$true] %s1475_s10 }
 0x20c   :  { %1731 = vmatprep.subr.mxu1 %v1201_v0  ;;  %1703 = vmatpush3.msra.mxu0 %v927_v63  ;;  %s1946_s30 = scalar_lea.vmem %s1476_s10, 256  ;;  %p1951_p13 = scmp.lt.s32.totalorder %s1476_s10, %s1476_s10 }
 0x20d   :  { %1732 = vmatpush3.msra.mxu1 %v1201_v0  ;;  %1705 = vmatmul.mubr.msk.f32.vlgmr.msra.gmra.mxu0 %vm175_vm0, %v2130_v43  ;;  %p1947_p12 = scmp.ne.s32.totalorder %s1476_s10, %s1946_s30  ;;  %p1952_p0 = scmp.lt.s32.totalorder %s1946_s30, %s1946_s30 }
 0x20e   :  { %1718 = vmatprep.subr.mxu0 %v1207_v1  ;;  %1733 = vmatprep.subr.mxu1 %v1200_v2 }
 0x20f   :  { %1719 = vmatpush3.msra.mxu0 %v1207_v1  ;;  %1726 = vmatprep.mubr.msk.f32.mxu0 %vm175_vm0, %v2128_v42  ;;  %p1953_p1 = por %p1952_p0, %p1951_p13 }
 0x210   :  { %1734 = vmatpush3.msra.mxu1 %v1200_v2  ;;  %1720 = vmatprep.subr.mxu0 %v1206_v4 }
 0x211   :  { %1735 = vmatprep.subr.mxu1 %v1199_v5  ;;  %1721 = vmatpush3.msra.mxu0 %v1206_v4  ;;  %p1954_p2 = pnand %p1953_p1, %p1947_p12 }
 0x212   :  { %1736 = vmatpush3.msra.mxu1 %v1199_v5  ;;  %1722 = vmatprep.subr.mxu0 %v1205_v6 }
 0x213   :  { %1738 = vmatmul.mubr.msk.f32.vlgmr.msra.gmra.mxu1 %vm175_vm0, %v2130_v43  ;;  %1723 = vmatpush3.msra.mxu0 %v1205_v6 }
 0x214   :  { %1724 = vmatprep.subr.mxu0 %v1204_v7 }
 0x215   :  { %1725 = vmatpush3.msra.mxu0 %v1204_v7 }
 0x216   :  { %1727 = vmatmul.mubr.msk.f32.vlgmr.msra.gmra.mxu0 %vm175_vm0, %v2138_v49  ;;  %1740 = vmatprep.subr.mxu0 %v1372_v9 }
 0x217   :  { %1741 = vmatpush3.msra.mxu0 %v1372_v9  ;;  %1748 = vmatprep.mubr.msk.f32.mxu0 %vm175_vm0, %v2098_v3 }
 0x218   :  { %1742 = vmatprep.subr.mxu0 %v1371_v10 }
 0x219   :  { %1743 = vmatpush3.msra.mxu0 %v1371_v10 }
 0x21a   :  { %1744 = vmatprep.subr.mxu0 %v1370_v11 }
 0x21b   :  { %1745 = vmatpush3.msra.mxu0 %v1370_v11 }
 0x21c   :  { %1746 = vmatprep.subr.mxu0 %v1369_v12 }
 0x21d   :  { %1747 = vmatpush3.msra.mxu0 %v1369_v12 }
 0x21e   :  { %1749 = vmatmul.mubr.msk.f32.vlgmr.msra.gmra.mxu0 %vm175_vm0, %v2102_v8 }
 0x2b6   :  { %v1673_v14 = vpop.f32.mrf.mxu1 }
 0x2b8   :  { %v808_v17 = vpop.f32.mrf.mxu1 }
 0x2ba   :  { %v1662_v13 = vpop.f32.mrf.mxu0 }
 0x2bb   :  { %v814_v16 = vadd.f32 %v1673_v14, %v1662_v13 }
 0x2bc   :  { %v727_v15 = vpop.f32.mrf.mxu0 }
 0x2bd   :  { %v809_v20 = vadd.f32 %v808_v17, %v727_v15  ;;  %v825_v22 = vadd.f32 %v1508_v18, %v814_v16 }
 0x2be   :  { %v1695_v24 = vpop.f32.mrf.mxu1 }
 0x2bf   :  { %v824_v26 = vadd.f32 %v1508_v18, %v809_v20 }
 0x2c0   :  { %v1002_v31 = vpop.f32.mrf.mxu1 }
 0x2c3   :  { %v1684_v21 = vpop.f32.mrf.mxu0 }
 0x2c4   :  { %v909_v23 = vadd.f32 %v1684_v21, %v1509_v19 }
 0x2c5   :  { %v903_v25 = vpop.f32.mrf.mxu0 }
 0x2c6   :  { %v913_v27 = vadd.f32 %v909_v23, %v825_v22  ;;  %v904_v28 = vadd.f32 %v1509_v19, %v903_v25 }
 0x2c8   :  { %v1513_v29 = vmul.f32 -1.442695, %v913_v27  ;;  %v912_v30 = vadd.f32 %v904_v28, %v824_v26 }
 0x2c9   :  { %v1717_v33 = vpop.f32.mrf.mxu1 }
 0x2ca   :  { %1766 = vpow2.f32 %v1513_v29  ;;  %v1512_v32 = vmul.f32 -1.442695, %v912_v30  ;;  %v1181_v38 = vadd.f32 %v1717_v33, %v1521_v34 }
 0x2cb   :  { %v1175_v40 = vpop.f32.mrf.mxu1 }
 0x2cc   :  { %1768 = vpow2.f32 %v1512_v32  ;;  %v1176_v43 = vadd.f32 %v1521_v34, %v1175_v40 }
 0x2cd   :  { %v1706_v35 = vpop.f32.mrf.mxu0 }
 0x2ce   :  { %v1083_v37 = vadd.f32 %v1706_v35, %v1695_v24 }
 0x2cf   :  { %v1077_v39 = vpop.f32.mrf.mxu0 }
 0x2d0   :  { %v1095_v41 = vadd.f32 %v1519_v36, %v1083_v37  ;;  %v1078_v42 = vadd.f32 %v1077_v39, %v1002_v31 }
 0x2d2   :  { %v1185_v44 = vadd.f32 %v1181_v38, %v1095_v41  ;;  %v1094_v45 = vadd.f32 %v1519_v36, %v1078_v42 }
 0x2d3   :  { %v1739_v55 = vpop.f32.mrf.mxu1 }
 0x2d4   :  { %v1184_v46 = vadd.f32 %v1176_v43, %v1094_v45  ;;  %v1525_v47 = vmul.f32 -1.442695, %v1185_v44 }
 0x2d5   :  { %v1349_v60 = vpop.f32.mrf.mxu1 }
 0x2d6   :  { %v1524_v49 = vmul.f32 -1.442695, %v1184_v46  ;;  %1770 = vpow2.f32 %v1525_v47  ;;  %v1728_v53 = vpop.f32.mrf.mxu0 }
 0x2d7   :  { %v1767_v48 = vpop.eup %1766  ;;  %v1355_v58 = vadd.f32 %v1739_v55, %v1728_v53 }
 0x2d8   :  { %v921_v50 = vadd.f32 1.0, %v1767_v48  ;;  %v1274_v54 = vpop.f32.mrf.mxu0 }
 0x2d9   :  { %v1769_v51 = vpop.eup %1768  ;;  %v1350_v0 = vadd.f32 %v1349_v60, %v1274_v54  ;;  %v1367_v4 = vadd.f32 %v1531_v61, %v1355_v58 }
 0x2da   :  { %1772 = vrcp.f32 %v921_v50  ;;  %v920_v52 = vadd.f32 1.0, %v1769_v51 }
 0x2db   :  { %1774 = vpow2.f32 %v1524_v49  ;;  %v1366_v10 = vadd.f32 %v1531_v61, %v1350_v0 }
 0x2dc   :  { %1776 = vrcp.f32 %v920_v52 }
 0x2de   :  { %v1750_v56 = vpop.f32.mrf.mxu0 }
 0x2df   :  { %v1453_v59 = vadd.f32 %v1750_v56, %v1533_v57 }
 0x2e0   :  { %v1447_v62 = vpop.f32.mrf.mxu0 }
 0x2e1   :  { %v1448_v6 = vadd.f32 %v1533_v57, %v1447_v62 }
 0x2e3   :  { %v1771_v63 = vpop.eup %1770 }
 0x2e4   :  { %v1193_v9 = vadd.f32 1.0, %v1771_v63 }
 0x2e7   :  { %v1773_v1 = vpop.eup %1772 }
 0x2e8   :  { %v1775_v2 = vpop.eup %1774  ;;  %v1457_v5 = vmul.f32 %v1773_v1, %v1453_v59 }
 0x2e9   :  { %v1777_v7 = vpop.eup %1776  ;;  %v1192_v13 = vadd.f32 1.0, %v1775_v2 }
 0x2ea   :  { %v1459_v11 = vadd.f32 %v1457_v5, %v1367_v4  ;;  %v1456_v12 = vmul.f32 %v1777_v7, %v1448_v6 }
 0x2ec   :  { %1778 = vtanh.f32 %v1459_v11  ;;  %v1458_v14 = vadd.f32 %v1456_v12, %v1366_v10 }
 0x2ed   :  { %1780 = vrcp.f32 %v1193_v9 }
 0x2ee   :  { %1782 = vtanh.f32 %v1458_v14 }
 0x2ef   :  { %1784 = vrcp.f32 %v1192_v13 }
 0x2f9   :  { %v1779_v15 = vpop.eup %1778 }
 0x2fa   :  { %v1781_v16 = vpop.eup %1780  ;;  %v1463_v17 = vsub.f32 %v2102_v8, %v1779_v15 }
 0x2fb   :  { %v1783_v18 = vpop.eup %1782 }
 0x2fc   :  { %v1462_v19 = vsub.f32 %v2098_v3, %v1783_v18  ;;  %v1465_v20 = vmul.f32 %v1781_v16, %v1463_v17  ;;  %v1785_v21 = vpop.eup %1784 }
 0x2fe   :  { %v1464_v22 = vmul.f32 %v1785_v21, %v1462_v19  ;;  %v1467_v23 = vsub.f32 %v2102_v8, %v1465_v20 }
 0x300   :  { %v1466_v24 = vsub.f32 %v2098_v3, %v1464_v22  ;;  %1469 = vst.msk [vmem:[#allocation16 + $0x8] sm:$0xff] %vm175_vm0, %v1467_v23 }
 0x302   :  { %1468 = vst.msk [vmem:[#allocation16] sm:$0xff] %vm175_vm0, %v1466_v24 }
 0x303   :  { %1957 = shalt.err (!%p1954_p2)
}
 0x304   :  { %1481 = dma.vmem_to_hbm [thread:$0]  %s1476_s10, 256, %s2209_s11, [#allocation4], %s1980_s22, %s1980_s22, %s1981_s23  }
 0x305   :  { %1976 = dma.done.wait [#allocation4], 256  }
 0x306   :  { %1977 = vsyncadd [#allocation4], 4294967040 }
 0x307   :  { %1485 = vsyncpa [#allocation3], 1 }
 0x308   :  { %1486 = vsyncpa [#allocation6], 1 }
 0x309   :  { %1487 = vsyncpa [#allocation9], 1 }
 0x30a   :  { %1488 = vsyncpa [#allocation12], 1 }
 0x30b   :  { %1489 = vsyncpa [#allocation15], 1 }
 0x30c   :  { %1490 = vsyncpa [#allocation4], 1 }

</bundles_post_ra>
